<compile_context>
chip_gen: v7x
topology: tpu7x:2x2x1
jax: 0.10.0
libtpu: 0.0.40
codegen_flags: <defaults>
</compile_context>

<pallas_src>
import functools
import math

import jax
import jax.numpy as jnp
from jax.experimental import pallas as pl
from jax.experimental.pallas import tpu as pltpu

# ----------------------- architecture constants (from the PyTorch file) -----------------------
attn_resolutions = (161,)
ch = 32
ch_mult = (1, 2, 4, 8)
double_z = False
dropout = 0.05            # TODO(synk): dropout omitted — eval-mode forward (identity)
in_channels = 2
num_res_blocks = 2
out_ch = 2
resolution = 1288
z_channels = 64

CONFIG = {"model_params": {"codebook_size": 32, "latent_dim": 8, "beta": 0.25}}

VMEM_LIMIT = 64 * 1024 * 1024


def _round_up(x, m):
    return (x + m - 1) // m * m


# ===================================== tiled GEMM =====================================
def _mm_kernel(a_ref, b_ref, bias_ref, o_ref, acc_ref):
    @pl.when(pl.program_id(2) == 0)
    def _():
        acc_ref[...] = jnp.zeros_like(acc_ref)

    acc_ref[...] += jnp.dot(a_ref[...], b_ref[...], preferred_element_type=jnp.float32)

    @pl.when(pl.program_id(2) == pl.num_programs(2) - 1)
    def _():
        o_ref[...] = acc_ref[...] + bias_ref[...]


@functools.lru_cache(maxsize=None)
def _build_matmul(m_pad, k_pad, n_pad, tm, tn, tk):
    fn = pl.pallas_call(
        _mm_kernel,
        out_shape=jax.ShapeDtypeStruct((m_pad, n_pad), jnp.float32),
        grid=(m_pad // tm, n_pad // tn, k_pad // tk),
        in_specs=[pl.BlockSpec((tm, tk), lambda i, j, kk: (i, kk)),
                  pl.BlockSpec((tk, tn), lambda i, j, kk: (kk, j)),
                  pl.BlockSpec((1, tn), lambda i, j, kk: (0, j))],
        out_specs=pl.BlockSpec((tm, tn), lambda i, j, kk: (i, j)),
        scratch_shapes=[pltpu.VMEM((tm, tn), jnp.float32)],
        compiler_params=pltpu.CompilerParams(
            dimension_semantics=("parallel", "parallel", "arbitrary"),
            vmem_limit_bytes=VMEM_LIMIT),
    )
    return jax.jit(fn)


def pallas_matmul(a, b, bias=None):
    """(M,K) @ (K,N) [+ bias]; bf16 MXU operands, f32 accumulation, M/N/K padded & tiled."""
    m, k = a.shape
    k2, n = b.shape
    assert k == k2
    tm = min(256, _round_up(m, 8))
    m_pad = _round_up(m, tm)
    tn = min(256, _round_up(n, 128))          # lane-dense output stores (>=128 lanes)
    n_pad = _round_up(n, tn)
    if k <= 1024:
        k_pad, tk = k, k
    else:
        k_pad = _round_up(k, 128)
        tk = next(c for c in (1024, 768, 512, 384, 256, 128) if k_pad % c == 0)

    a_p = a if (m_pad, k_pad) == (m, k) else jnp.pad(a, ((0, m_pad - m), (0, k_pad - k)))
    b_p = b if (k_pad, n_pad) == (k, n) else jnp.pad(b, ((0, k_pad - k), (0, n_pad - n)))
    if bias is None:
        bias_p = jnp.zeros((1, n_pad), jnp.float32)
    else:
        bias_p = jnp.pad(bias.astype(jnp.float32), (0, n_pad - n)).reshape(1, n_pad)

    out = _build_matmul(m_pad, k_pad, n_pad, tm, tn, tk)(
        a_p.astype(jnp.bfloat16), b_p.astype(jnp.bfloat16), bias_p)
    return out[:m, :n]


# ===================================== GroupNorm (NHWC) =====================================
def _gn_stats_kernel(x_ref, s_ref, q_ref):
    @pl.when(pl.program_id(1) == 0)
    def _():
        s_ref[...] = jnp.zeros_like(s_ref)
        q_ref[...] = jnp.zeros_like(q_ref)

    x = x_ref[...]                                       # (1, t_hw, C)
    s_ref[...] += jnp.sum(x, axis=1, keepdims=True)      # per-channel sums
    q_ref[...] += jnp.sum(x * x, axis=1, keepdims=True)


def _gn_apply_kernel(x_ref, sc_ref, sh_ref, o_ref, *, silu):
    y = x_ref[...] * sc_ref[...] + sh_ref[...]           # (1,t_hw,C) * (1,1,C)
    if silu:
        y = y * jax.nn.sigmoid(y)                        # fused swish
    o_ref[...] = y


@functools.lru_cache(maxsize=None)
def _build_gn_stats(b, hw_pad, c, t_hw):
    fn = pl.pallas_call(
        _gn_stats_kernel,
        out_shape=(jax.ShapeDtypeStruct((b, 1, c), jnp.float32),
                   jax.ShapeDtypeStruct((b, 1, c), jnp.float32)),
        grid=(b, hw_pad // t_hw),
        in_specs=[pl.BlockSpec((1, t_hw, c), lambda i, t: (i, t, 0))],
        out_specs=(pl.BlockSpec((1, 1, c), lambda i, t: (i, 0, 0)),
                   pl.BlockSpec((1, 1, c), lambda i, t: (i, 0, 0))),
        compiler_params=pltpu.CompilerParams(
            dimension_semantics=("parallel", "arbitrary"),
            vmem_limit_bytes=VMEM_LIMIT),
    )
    return jax.jit(fn)


@functools.lru_cache(maxsize=None)
def _build_gn_apply(b, hw_pad, c, t_hw, silu):
    kern = functools.partial(_gn_apply_kernel, silu=silu)
    fn = pl.pallas_call(
        kern,
        out_shape=jax.ShapeDtypeStruct((b, hw_pad, c), jnp.float32),
        grid=(b, hw_pad // t_hw),
        in_specs=[pl.BlockSpec((1, t_hw, c), lambda i, t: (i, t, 0)),
                  pl.BlockSpec((1, 1, c), lambda i, t: (i, 0, 0)),
                  pl.BlockSpec((1, 1, c), lambda i, t: (i, 0, 0))],
        out_specs=pl.BlockSpec((1, t_hw, c), lambda i, t: (i, t, 0)),
        compiler_params=pltpu.CompilerParams(
            dimension_semantics=("parallel", "parallel"),
            vmem_limit_bytes=VMEM_LIMIT),
    )
    return jax.jit(fn)


def group_norm(x, gamma, beta, *, num_groups=32, eps=1e-6, silu=False):
    """PyTorch GroupNorm(32, C, eps=1e-6) directly on NHWC, optionally fused with SiLU."""
    b, h, w, c = x.shape
    g = num_groups
    cg = c // g
    hw = h * w
    xr = x.reshape(b, hw, c)
    t_hw = hw if hw <= 2048 else 2048
    hw_pad = _round_up(hw, t_hw)
    if hw_pad != hw:
        xr = jnp.pad(xr, ((0, 0), (0, hw_pad - hw), (0, 0)))   # zero pad: sums unaffected

    s, q = _build_gn_stats(b, hw_pad, c, t_hw)(xr)
    s = s.reshape(b, g, cg).sum(-1)                      # per-(sample, group)
    q = q.reshape(b, g, cg).sum(-1)
    count = float(hw * cg)
    mean = s / count
    var = q / count - mean * mean
    rstd = jax.lax.rsqrt(var + eps)
    mean_c = jnp.repeat(mean, cg, axis=1)                # (b, c)
    rstd_c = jnp.repeat(rstd, cg, axis=1)
    scale = (gamma[None, :] * rstd_c).reshape(b, 1, c)
    shift = (beta[None, :] - mean_c * gamma[None, :] * rstd_c).reshape(b, 1, c)

    y = _build_gn_apply(b, hw_pad, c, t_hw, bool(silu))(xr, scale, shift)
    return y[:, :hw, :].reshape(b, h, w, c)


# ===================================== flash attention =====================================
def _flash_kernel(q_ref, k_ref, v_ref, o_ref, m_sc, l_sc, acc_sc, *, scale, seq_len, tkv):
    kv = pl.program_id(2)

    @pl.when(kv == 0)
    def _():
        m_sc[...] = jnp.full(m_sc.shape, -1e30, dtype=m_sc.dtype)
        l_sc[...] = jnp.zeros_like(l_sc)
        acc_sc[...] = jnp.zeros_like(acc_sc)

    s = jnp.einsum('bqd,bkd->bqk', q_ref[...], k_ref[...],
                   preferred_element_type=jnp.float32) * scale
    col = kv * tkv + jax.lax.broadcasted_iota(jnp.int32, s.shape, 2)
    s = jnp.where(col < seq_len, s, -1e30)               # mask padded KV rows

    m_prev = m_sc[...]
    m_new = jnp.maximum(m_prev, jnp.max(s, axis=-1, keepdims=True))
    alpha = jnp.exp(m_prev - m_new)
    p = jnp.exp(s - m_new)
    l_sc[...] = alpha * l_sc[...] + jnp.sum(p, axis=-1, keepdims=True)
    acc_sc[...] = alpha * acc_sc[...] + jnp.einsum(
        'bqk,bkd->bqd', p.astype(v_ref.dtype), v_ref[...],
        preferred_element_type=jnp.float32)
    m_sc[...] = m_new

    @pl.when(kv == pl.num_programs(2) - 1)
    def _():
        o_ref[...] = acc_sc[...] * pl.reciprocal(l_sc[...], approx=True)


@functools.lru_cache(maxsize=None)
def _build_flash(b, s_pad, d, tq, tkv, seq_len, scale):
    kern = functools.partial(_flash_kernel, scale=scale, seq_len=seq_len, tkv=tkv)
    fn = pl.pallas_call(
        kern,
        out_shape=jax.ShapeDtypeStruct((b, s_pad, d), jnp.float32),
        grid=(b, s_pad // tq, s_pad // tkv),
        in_specs=[pl.BlockSpec((1, tq, d), lambda bi, qi, ki: (bi, qi, 0)),
                  pl.BlockSpec((1, tkv, d), lambda bi, qi, ki: (bi, ki, 0)),
                  pl.BlockSpec((1, tkv, d), lambda bi, qi, ki: (bi, ki, 0))],
        out_specs=pl.BlockSpec((1, tq, d), lambda bi, qi, ki: (bi, qi, 0)),
        scratch_shapes=[pltpu.VMEM((1, tq, 1), jnp.float32),
                        pltpu.VMEM((1, tq, 1), jnp.float32),
                        pltpu.VMEM((1, tq, d), jnp.float32)],
        compiler_params=pltpu.CompilerParams(
            dimension_semantics=("parallel", "parallel", "arbitrary"),
            vmem_limit_bytes=VMEM_LIMIT),
    )
    return jax.jit(fn)


def flash_attention(q, k, v, *, scale):
    """Fused online-softmax attention: (B,S,D) x3 -> (B,S,D). No (S,S) score matrix in HBM."""
    b, s, d = q.shape
    tq = tkv = s if s <= 512 else 256
    s_pad = _round_up(s, tq)

    def prep(t):
        if s_pad != s:
            t = jnp.pad(t, ((0, 0), (0, s_pad - s), (0, 0)))
        return t.astype(jnp.bfloat16)

    o = _build_flash(b, s_pad, d, tq, tkv, s, float(scale))(prep(q), prep(k), prep(v))
    return o[:, :s, :]


# ===================================== fused VQ =====================================
def _vq_kernel(z_ref, e_ref, esq_ref, zq_ref, idx_ref):
    z = z_ref[...]                                       # (tm, d) f32
    e = e_ref[...]                                       # (K, d)  f32
    dots = jnp.einsum('md,kd->mk', z, e, preferred_element_type=jnp.float32)
    dist = esq_ref[...] - 2.0 * dots                     # ||z||^2 dropped (constant per row)
    num_k = dist.shape[-1]
    iota = jax.lax.broadcasted_iota(jnp.int32, dist.shape, 1)
    dmin = jnp.min(dist, axis=-1, keepdims=True)
    idx = jnp.min(jnp.where(dist == dmin, iota, num_k), axis=-1, keepdims=True)   # (tm,1)
    idx_ref[...] = idx
    one_hot = (iota == idx).astype(jnp.float32)
    zq_ref[...] = jnp.dot(one_hot, e, preferred_element_type=jnp.float32)


@functools.lru_cache(maxsize=None)
def _build_vq(m_pad, tm, k_codes, d):
    fn = pl.pallas_call(
        _vq_kernel,
        out_shape=(jax.ShapeDtypeStruct((m_pad, d), jnp.float32),
                   jax.ShapeDtypeStruct((m_pad, 1), jnp.int32)),
        grid=(m_pad // tm,),
        in_specs=[pl.BlockSpec((tm, d), lambda i: (i, 0)),
                  pl.BlockSpec((k_codes, d), lambda i: (0, 0)),
                  pl.BlockSpec((1, k_codes), lambda i: (0, 0))],
        out_specs=(pl.BlockSpec((tm, d), lambda i: (i, 0)),
                   pl.BlockSpec((tm, 1), lambda i: (i, 0))),
        compiler_params=pltpu.CompilerParams(
            dimension_semantics=("parallel",),
            vmem_limit_bytes=VMEM_LIMIT),
    )
    return jax.jit(fn)


# ===================================== conv / block glue =====================================
def conv2d(x, w, b, *, stride=1, pad=None):
    """NHWC conv: im2col patch extraction (JAX glue) + Pallas tiled GEMM (hot path)."""
    bb, h, ww, cin = x.shape
    kh, kw, _, cout = w.shape
    if kh == 1 and kw == 1 and stride == 1:
        y = pallas_matmul(x.reshape(bb * h * ww, cin), w.reshape(cin, cout), b)
        return y.reshape(bb, h, ww, cout)
    if pad is None:
        pad = ((kh // 2, kh // 2), (kw // 2, kw // 2))
    xp = jnp.pad(x, ((0, 0), pad[0], pad[1], (0, 0)))
    hp, wp = xp.shape[1], xp.shape[2]
    ho = (hp - kh) // stride + 1
    wo = (wp - kw) // stride + 1
    cols = []
    for dh in range(kh):
        for dw in range(kw):
            cols.append(xp[:, dh:dh + (ho - 1) * stride + 1:stride,
                           dw:dw + (wo - 1) * stride + 1:stride, :])
    # TODO(synk): fuse tap extraction into the GEMM (manual halo DMA) to avoid the kh*kw x
    #             HBM inflation of the patches array at full resolution.
    patches = jnp.concatenate(cols, axis=-1).reshape(bb * ho * wo, kh * kw * cin)
    y = pallas_matmul(patches, w.reshape(kh * kw * cin, cout), b)
    return y.reshape(bb, ho, wo, cout)


def resnet_block(x, p):
    h = group_norm(x, *p["norm1"], silu=True)
    h = conv2d(h, *p["conv1"])
    h = group_norm(h, *p["norm2"], silu=True)
    # dropout (p=0.05) is identity in eval mode
    h = conv2d(h, *p["conv2"])
    if "nin" in p:
        x = conv2d(x, *p["nin"])
    return x + h


def attn_block(x, p):
    bsz, h, w, c = x.shape
    hw = h * w
    hn = group_norm(x, *p["norm"], silu=False)
    q = conv2d(hn, *p["q"]).reshape(bsz, hw, c)
    k = conv2d(hn, *p["k"]).reshape(bsz, hw, c)
    v = conv2d(hn, *p["v"]).reshape(bsz, hw, c)
    o = flash_attention(q, k, v, scale=1.0 / math.sqrt(c)).reshape(bsz, h, w, c)
    o = conv2d(o, *p["proj"])
    return x + o


def downsample(x, w, b):
    # torch: F.pad(x, (0,1,0,1)) then Conv2d(k=3, stride=2, padding=0)
    xp = jnp.pad(x, ((0, 0), (0, 1), (0, 1), (0, 0)))
    return conv2d(xp, w, b, stride=2, pad=((0, 0), (0, 0)))


def upsample(x, w, b):
    # TODO(synk): fold the nearest 2x repeat into the conv's input read to cut HBM traffic 4x.
    x = jnp.repeat(jnp.repeat(x, 2, axis=1), 2, axis=2)
    return conv2d(x, w, b)


# ===================================== parameter init =====================================
class _Keys:
    def __init__(self, key):
        self._key = key

    def __call__(self):
        self._key, k = jax.random.split(self._key)
        return k


def conv_p(kg, kh, kw, cin, cout, scale=0.05):
    w = scale * jax.random.normal(kg(), (kh, kw, cin, cout), jnp.float32)
    b = scale * jax.random.normal(kg(), (cout,), jnp.float32)
    return (w, b)


def gn_p(c):
    return (jnp.ones((c,), jnp.float32), jnp.zeros((c,), jnp.float32))


def resblock_p(kg, cin, cout):
    p = {"norm1": gn_p(cin), "conv1": conv_p(kg, 3, 3, cin, cout),
         "norm2": gn_p(cout), "conv2": conv_p(kg, 3, 3, cout, cout)}
    if cin != cout:
        p["nin"] = conv_p(kg, 1, 1, cin, cout)
    return p


def attn_p(kg, c):
    return {"norm": gn_p(c), "q": conv_p(kg, 1, 1, c, c), "k": conv_p(kg, 1, 1, c, c),
            "v": conv_p(kg, 1, 1, c, c), "proj": conv_p(kg, 1, 1, c, c)}


def build_encoder_params(kg):
    p = {"conv_in": conv_p(kg, 3, 3, in_channels, ch)}
    in_ch_mult = (1,) + tuple(ch_mult)
    curr_res = resolution
    down = []
    block_in = ch
    for i in range(len(ch_mult)):
        block_in = ch * in_ch_mult[i]
        block_out = ch * ch_mult[i]
        blocks, attns = [], []
        for _ in range(num_res_blocks):
            blocks.append(resblock_p(kg, block_in, block_out))
            block_in = block_out
            attns.append(attn_p(kg, block_in) if curr_res in attn_resolutions else None)
        level = {"blocks": blocks, "attns": attns}
        if i != len(ch_mult) - 1:
            level["downsample"] = conv_p(kg, 3, 3, block_in, block_in)
            curr_res //= 2
        down.append(level)
    p["down"] = down
    p["mid_block1"] = resblock_p(kg, block_in, block_in)
    p["mid_attn"] = attn_p(kg, block_in)
    p["mid_block2"] = resblock_p(kg, block_in, block_in)
    p["norm_out"] = gn_p(block_in)
    zc = 2 * z_channels if double_z else z_channels
    p["conv_out"] = conv_p(kg, 3, 3, block_in, zc)
    return p


def encoder_forward(x, p):
    h = conv2d(x, *p["conv_in"])
    for level in p["down"]:
        for blk, att in zip(level["blocks"], level["attns"]):
            h = resnet_block(h, blk)
            if att is not None:
                h = attn_block(h, att)
        if "downsample" in level:
            h = downsample(h, *level["downsample"])
    h = resnet_block(h, p["mid_block1"])
    h = attn_block(h, p["mid_attn"])
    h = resnet_block(h, p["mid_block2"])
    h = group_norm(h, *p["norm_out"], silu=True)
    h = conv2d(h, *p["conv_out"])
    return h


def build_decoder_params(kg):
    block_in = ch * ch_mult[-1]
    curr_res = resolution // (2 ** (len(ch_mult) - 1))   # 161 -> attn at the deepest level
    p = {"conv_in": conv_p(kg, 3, 3, z_channels, block_in)}
    p["mid_block1"] = resblock_p(kg, block_in, block_in)
    p["mid_attn"] = attn_p(kg, block_in)
    p["mid_block2"] = resblock_p(kg, block_in, block_in)
    up = []
    for i in reversed(range(len(ch_mult))):
        block_out = ch * ch_mult[i]
        blocks, attns = [], []
        for _ in range(num_res_blocks + 1):
            blocks.append(resblock_p(kg, block_in, block_out))
            block_in = block_out
            attns.append(attn_p(kg, block_in) if curr_res in attn_resolutions else None)
        level = {"blocks": blocks, "attns": attns}
        if i != 0:
            level["upsample"] = conv_p(kg, 3, 3, block_in, block_in)
            curr_res *= 2
        up.insert(0, level)
    p["up"] = up
    p["norm_out"] = gn_p(block_in)
    p["conv_out"] = conv_p(kg, 3, 3, block_in, out_ch)
    return p


def decoder_forward(z, p):
    h = conv2d(z, *p["conv_in"])
    h = resnet_block(h, p["mid_block1"])
    h = attn_block(h, p["mid_attn"])
    h = resnet_block(h, p["mid_block2"])
    for i in reversed(range(len(ch_mult))):
        level = p["up"][i]
        for blk, att in zip(level["blocks"], level["attns"]):
            h = resnet_block(h, blk)
            if att is not None:
                h = attn_block(h, att)
        if "upsample" in level:
            h = upsample(h, *level["upsample"])
    h = group_norm(h, *p["norm_out"], silu=True)
    h = conv2d(h, *p["conv_out"])
    return h


# ===================================== full VQVAE =====================================
class VQVAEPallas:
    def __init__(self, config, key):
        mp = config["model_params"]
        self.num_embeddings = mp["codebook_size"]
        self.e_dim = mp["latent_dim"]
        self.beta = mp.get("beta", 0.25)
        kg = _Keys(key)
        self.enc = build_encoder_params(kg)
        self.dec = build_decoder_params(kg)
        self.quant_conv = conv_p(kg, 1, 1, z_channels, self.e_dim)
        self.post_quant_conv = conv_p(kg, 1, 1, self.e_dim, z_channels)
        lim = 1.0 / self.num_embeddings
        self.embedding = jax.random.uniform(kg(), (self.num_embeddings, self.e_dim),
                                            jnp.float32, -lim, lim)
        # on-device counts (original keeps a Python list; device bincount avoids a host sync)
        self.counts = jnp.zeros((self.num_embeddings,), jnp.int32)
        self.training = False

    def quantize(self, z):
        bsz, h, w, d = z.shape
        zf = z.reshape(-1, d)
        m = zf.shape[0]
        K = self.num_embeddings
        m8 = _round_up(m, 8)
        tm = m8 if m8 <= 1024 else 512
        m_pad = _round_up(m, tm)
        zp = zf if m_pad == m else jnp.pad(zf, ((0, m_pad - m), (0, 0)))
        esq = jnp.sum(self.embedding ** 2, axis=1).reshape(1, K)
        zq_p, idx_p = _build_vq(m_pad, tm, K, d)(zp, self.embedding, esq)
        zq = zq_p[:m].reshape(bsz, h, w, d)
        idx = idx_p[:m, 0]
        # codebook + beta*commitment loss; at inference z_q == z + sg(z_q - z) in value
        loss = (1.0 + self.beta) * jnp.mean((zq - z) ** 2)
        one_hot = jax.nn.one_hot(idx, K, dtype=jnp.float32)
        e_mean = jnp.mean(one_hot, axis=0)
        perplexity = jnp.exp(-jnp.sum(e_mean * jnp.log(e_mean + 1e-10)))
        return loss, zq, (perplexity, one_hot, idx)

    def encode(self, x_nhwc):
        h = encoder_forward(x_nhwc, self.enc)
        return conv2d(h, *self.quant_conv)

    def decode(self, zq):
        q = conv2d(zq, *self.post_quant_conv)
        return decoder_forward(q, self.dec)

    def forward(self, x_nchw):
        x = jnp.transpose(x_nchw, (0, 2, 3, 1))          # NCHW -> NHWC for kernels
        z = self.encode(x)
        loss, zq, info = self.quantize(z)
        dec = self.decode(zq)
        x_recon = jnp.transpose(dec, (0, 3, 1, 2))       # back to NCHW
        if not self.training:
            self.counts = self.counts + jnp.bincount(info[2], length=self.num_embeddings)
        return loss, x_recon, info


# ===================================== demo =====================================
if __name__ == "__main__":
    root = jax.random.PRNGKey(0)
    pkey, xkey = jax.random.split(root)
    model = VQVAEPallas(CONFIG, pkey)
    # small shapes consistent with the module: batch=2, in_channels=2, 16x16 "mel" grid
    x = jax.random.normal(xkey, (2, in_channels, 16, 16), jnp.float32)
    loss, x_recon, info = model.forward(x)
    jax.block_until_ready(x_recon)
    jax.block_until_ready(loss)
    jax.block_until_ready(info[0])
    jax.block_until_ready(model.counts)
    assert x_recon.shape == x.shape and x_recon.dtype == jnp.float32
    assert bool(jnp.isfinite(loss)) and bool(jnp.all(jnp.isfinite(x_recon)))
    print("KERNEL_OK")
</pallas_src>

<mosaic_0001>
module attributes {stable_mosaic.version = 11 : i64} {
  func.func @_mm_kernel(%arg0: i32, %arg1: i32, %arg2: i32, %arg3: memref<256x18xbf16, #tpu.memory_space<vmem>>, %arg4: memref<18x128xbf16, #tpu.memory_space<vmem>>, %arg5: memref<1x128xf32, #tpu.memory_space<vmem>>, %arg6: memref<256x128xf32, #tpu.memory_space<vmem>>, %arg7: memref<256x128xf32, #tpu.memory_space<vmem>>) attributes {dimension_semantics = [#tpu.dimension_semantics<parallel>, #tpu.dimension_semantics<parallel>, #tpu.dimension_semantics<arbitrary>], iteration_bounds = array<i64: 2, 1, 1>, scalar_prefetch = 0 : i64, scratch_operands = 1 : i64, tpu.core_type = #tpu.core_type<tc>, window_params = [{transform_indices = @transform_0, window_bounds = array<i64: 256, 18>}, {transform_indices = @transform_1, window_bounds = array<i64: 18, 128>}, {transform_indices = @transform_2, window_bounds = array<i64: 1, 128>}, {transform_indices = @transform_3, window_bounds = array<i64: 256, 128>}]} {
    %c0_i32 = arith.constant 0 : i32
    %0 = arith.cmpi eq, %arg2, %c0_i32 : i32
    %1 = arith.extui %0 : i1 to i32
    %c0_i32_0 = arith.constant 0 : i32
    %2 = arith.cmpi ne, %1, %c0_i32_0 : i32
    scf.if %2 {
      %cst_10 = arith.constant 0.000000e+00 : f32
      %12 = vector.broadcast %cst_10 : f32 to vector<256x128xf32>
      %c0_11 = arith.constant 0 : index
      %c0_12 = arith.constant 0 : index
      %13 = vector.load %arg7[%c0_11, %c0_12] : memref<256x128xf32, #tpu.memory_space<vmem>>, vector<256x128xf32>
      tpu.vector_store %arg7[%c0_11, %c0_12], %12 {strides = array<i32>} : memref<256x128xf32, #tpu.memory_space<vmem>>, vector<256x128xf32>,
    } else {
    }
    %c0 = arith.constant 0 : index
    %c0_1 = arith.constant 0 : index
    %3 = vector.load %arg7[%c0, %c0_1] : memref<256x128xf32, #tpu.memory_space<vmem>>, vector<256x128xf32>
    %c0_2 = arith.constant 0 : index
    %c0_3 = arith.constant 0 : index
    %4 = vector.load %arg3[%c0_2, %c0_3] : memref<256x18xbf16, #tpu.memory_space<vmem>>, vector<256x18xbf16>
    %c0_4 = arith.constant 0 : index
    %c0_5 = arith.constant 0 : index
    %5 = vector.load %arg4[%c0_4, %c0_5] : memref<18x128xbf16, #tpu.memory_space<vmem>>, vector<18x128xbf16>
    %cst = arith.constant dense<0.000000e+00> : vector<256x128xf32>
    %6 = tpu.matmul %4, %5, %cst {dimension_numbers = #tpu.dot_dimension_numbers<[1], [0], [0], [1], [0, 0, 1, 1], [], []>} : vector<256x18xbf16>, vector<18x128xbf16>, vector<256x128xf32> -> vector<256x128xf32>
    %7 = arith.addf %3, %6 : vector<256x128xf32>
    %c0_6 = arith.constant 0 : index
    %c0_7 = arith.constant 0 : index
    %8 = vector.load %arg7[%c0_6, %c0_7] : memref<256x128xf32, #tpu.memory_space<vmem>>, vector<256x128xf32>
    tpu.vector_store %arg7[%c0_6, %c0_7], %7 {strides = array<i32>} : memref<256x128xf32, #tpu.memory_space<vmem>>, vector<256x128xf32>,
    %c0_i32_8 = arith.constant 0 : i32
    %9 = arith.cmpi eq, %arg2, %c0_i32_8 : i32
    %10 = arith.extui %9 : i1 to i32
    %c0_i32_9 = arith.constant 0 : i32
    %11 = arith.cmpi ne, %10, %c0_i32_9 : i32
    scf.if %11 {
      %c0_10 = arith.constant 0 : index
      %c0_11 = arith.constant 0 : index
      %12 = vector.load %arg7[%c0_10, %c0_11] : memref<256x128xf32, #tpu.memory_space<vmem>>, vector<256x128xf32>
      %c0_12 = arith.constant 0 : index
      %c0_13 = arith.constant 0 : index
      %13 = vector.load %arg5[%c0_12, %c0_13] : memref<1x128xf32, #tpu.memory_space<vmem>>, vector<1x128xf32>
      %14 = vector.broadcast %13 : vector<1x128xf32> to vector<256x128xf32>
      %15 = arith.addf %12, %14 : vector<256x128xf32>
      %c0_14 = arith.constant 0 : index
      %c0_15 = arith.constant 0 : index
      %16 = vector.load %arg6[%c0_14, %c0_15] : memref<256x128xf32, #tpu.memory_space<vmem>>, vector<256x128xf32>
      tpu.vector_store %arg6[%c0_14, %c0_15], %15 {strides = array<i32>} : memref<256x128xf32, #tpu.memory_space<vmem>>, vector<256x128xf32>,
    } else {
    }
    return
  }
  func.func @transform_0(%arg0: i32, %arg1: i32, %arg2: i32) -> (i32, i32) {
    %c0_i32 = arith.constant 0 : i32
    return %arg0, %arg2 : i32, i32
  }
  func.func @transform_1(%arg0: i32, %arg1: i32, %arg2: i32) -> (i32, i32) {
    %c0_i32 = arith.constant 0 : i32
    return %arg2, %arg1 : i32, i32
  }
  func.func @transform_2(%arg0: i32, %arg1: i32, %arg2: i32) -> (i32, i32) {
    %c0_i32 = arith.constant 0 : i32
    %c0_i32_0 = arith.constant 0 : i32
    return %c0_i32, %arg1 : i32, i32
  }
  func.func @transform_3(%arg0: i32, %arg1: i32, %arg2: i32) -> (i32, i32) {
    %c0_i32 = arith.constant 0 : i32
    return %arg0, %arg1 : i32, i32
  }
}

</mosaic_0001>

<bundles_post_ra>
// kernel: tpu_custom_call.1
= control target key start
LH: loop header
LB: loop body
LE: loop exit
PB: predicated region body
PF: predicated region fallthrough
CT: control target
= control target key end

     0   :  { %8 = vsyncpa [#allocation4], 0  ;;  %s1755_s0 = inlined_call_operand.hbm [shape: bf16[512,18], index: 0, kind: input, shape index: {}]   ;;  %s1756_s1 = inlined_call_operand.hbm [shape: bf16[18,128], index: 1, kind: input, shape index: {}]   ;;  %s1757_s2 = inlined_call_operand.hbm [shape: f32[1,128], index: 2, kind: input, shape index: {}]   ;;  %s1758_s3 = inlined_call_operand.hbm [shape: f32[512,128], index: 3, kind: output, shape index: {}]  }
   0x1   :  { %10 = vsyncpa [#allocation4 + $0x1], 0 }
   0x2   :  { %11 = vsyncpa [#allocation7], 0 }
   0x3   :  { %12 = vsyncpa [#allocation5], 0 }
   0x4   :  { %14 = vsyncpa [#allocation5 + $0x1], 0  ;;  %s1389_s12 = smov 0   ;;  %s1391_s13 = smov 0  }
   0x5   :  { %s1393_s14 = smov 0   ;;  %s1395_s15 = smov 0  }
   0x6   :  { %s1397_s16 = smov 0   ;;  %s1399_s17 = smov 0  }
   0x7 LB: > { %s966_s18 = sadd.s32 4294967295, %s1359_s17   ;;  %s967_s19 = sadd.s32 4294967294, %s1359_s17   ;;  %s1359_s17 = sphi %s1399_s17, %s20_s17   ;;  %s1355_s16 = sphi %s1397_s16, %s1780_s16   ;;  %s1351_s15 = sphi %s1395_s15, %s1779_s15   ;;  %s1347_s14 = sphi %s1393_s14, %s1778_s14   ;;  %s1343_s13 = sphi %s1391_s13, %s1777_s13   ;;  %s1339_s12 = sphi %s1389_s12, %s1776_s12  }
   0x8   : > { %p61_p0 = scmp.ne.s32.totalorder %s1343_s13, %s1339_s12  ;;  %p1423_p1 = scmp.eq.s32.totalorder %s966_s18, 0 }
   0x9   : > { %p1427_p2 = scmp.eq.s32.totalorder %s966_s18, 1  ;;  %p147_p3 = scmp.eq.s32.totalorder %s967_s19, 1 }
   0xa   : > { %s1763_s20 = scalar_select %p1423_p1, 1, 0 }
   0xb   : > { %p1433_p4 = por %p1423_p1, %p61_p0  ;;  %p968_p5 = scmp.ge.s32.totalorder %s1359_s17, 1 }
   0xc   : > { %p1438_p6 = por %p147_p3, %p61_p0  ;;  %p154_p7 = scmp.lt.s32.totalorder %s1359_s17, 3 }
   0xd   : > { %s1765_s22 = scalar_select %p1433_p4, 1, 0 }
   0xe   : > { %s1766_s23 = scalar_select %p1438_p6, 1, 0 }
   0xf   : > { %p1443_p8 = pnand %p968_p5, %p154_p7  ;;  %s1361_s25 = smov [#allocation6]  }
  0x10   : > { %s170_s26 = sshll.u32 %s1361_s25, 4  ;;  %s1362_s28 = smov [#allocation8]   ;;  %s1447_s26 = int_to_ptr.vmem [resolvable:$true] %s170_s26 }
  0x11   : > { %p1094_p9 = pneg %p1443_p8  ;;  %s186_s29 = sshll.u32 %s1362_s28, 4  ;;  %s1458_s29 = int_to_ptr.vmem [resolvable:$true] %s186_s29 }
  0x12   : > { %s1187_s5 = scalar_lea.hbm %s1756_s1, 192 }
  0x13   : > { %p1454_p11 = pnand %p1094_p9, %p1423_p1  ;;  %p1188_p12 = scmp.ne.s32.totalorder %s1756_s1, %s1187_s5 }
  0x14   : > { %p1194_p5 = scmp.lt.u32.totalorder %s1187_s5, %s1756_s1 }
  0x15   : > { %p1189_p13 = pneg %p1454_p11 }
  0x17   : > { %p1190_p0 = pnand %p1189_p13, %p1188_p12 }
  0x19   : > { %p1191_p3 = pneg %p1190_p0 }
  0x1b   : > { %p1196_p7 = pnand %p1194_p5, %p1191_p3 }
  0x1d   : > { %1199 = shalt.err (!%p1196_p7)
}
  0x1e   : > { %s1200_s10 = scalar_lea.vmem %s1447_s26, 192  ;;  %p1208_p1 = scmp.lt.s32.totalorder %s1447_s26, %s1447_s26 }
  0x1f   : > { %p1201_p9 = scmp.ne.s32.totalorder %s1447_s26, %s1200_s10  ;;  %p1209_p12 = scmp.lt.s32.totalorder %s1200_s10, %s1200_s10 }
  0x21   : > { %p1203_p10 = pnand %p1201_p9, %p1189_p13  ;;  %p1210_p0 = por %p1209_p12, %p1208_p1 }
  0x23   : > { %p1204_p6 = pneg %p1203_p10 }
  0x25   : > { %p1211_p4 = pnand %p1210_p0, %p1204_p6 }
  0x27   : > { %1214 = shalt.err (!%p1211_p4)
}
  0x28   : > { %s1363_s11 = smov 64   ;;  %s1364_s18 = smov 4  }
  0x29   : > { %1097 = dma.hbm_to_vmem [thread:$0]  (!%p1454_p11), %s1756_s1, 192, %s1447_s26, [#allocation7], %s1363_s11, %s1363_s11, %s1364_s18  }
  0x2a   : > { %s1215_s4 = scalar_lea.hbm %s1757_s2, 16 }
  0x2b   : > { %p1216_p1 = scmp.ne.s32.totalorder %s1757_s2, %s1215_s4  ;;  %p1222_p10 = scmp.lt.u32.totalorder %s1215_s4, %s1757_s2 }
  0x2d   : > { %p1218_p4 = pnand %p1216_p1, %p1189_p13 }
  0x2f   : > { %p1219_p6 = pneg %p1218_p4 }
  0x31   : > { %p1224_p3 = pnand %p1222_p10, %p1219_p6 }
  0x33   : > { %1227 = shalt.err (!%p1224_p3)
}
  0x34   : > { %s1228_s26 = scalar_lea.vmem %s1458_s29, 16  ;;  %s1235_s9 = scalar_lea.vmem %s1458_s29, 32 }
  0x35   : > { %p1229_p5 = scmp.ne.s32.totalorder %s1458_s29, %s1228_s26  ;;  %p1236_p12 = scmp.lt.s32.totalorder %s1458_s29, %s1458_s29 }
  0x36   : > { %p1237_p0 = scmp.lt.s32.totalorder %s1235_s9, %s1228_s26 }
  0x37   : > { %p1231_p7 = pnand %p1229_p5, %p1189_p13 }
  0x38   : > { %p1238_p1 = por %p1237_p0, %p1236_p12 }
  0x39   : > { %p1232_p9 = pneg %p1231_p7 }
  0x3b   : > { %p1239_p4 = pnand %p1238_p1, %p1232_p9 }
  0x3d   : > { %1242 = shalt.err (!%p1239_p4)
}
  0x3e   : > { %1100 = dma.hbm_to_vmem [thread:$0]  (!%p1454_p11), %s1757_s2, 16, %s1458_s29, [#allocation7]  }
  0x3f   : > { %s39_s25 = sadd.s32 1, %s1355_s16  ;;  %s48_s28 = sadd.s32 1, %s1347_s14 }
  0x40   : > { %p41_p13 = scmp.ge.s32.totalorder %s39_s25, 2  ;;  %p55_p6 = scmp.ne.s32.totalorder %s1347_s14, %s1343_s13 }
  0x41   : > { %p56_p10 = scmp.eq.s32.totalorder %s1359_s17, 0  ;;  %p1111_p3 = scmp.lt.s32.totalorder %s1359_s17, 2 }
  0x42   : > { %s1782_s25 = smov (%p41_p13, %s39_s25), 0  ;;  %p1526_p7 = por %p1427_p2, %p55_p6 }
  0x43   : > { %p57_p5 = por %p56_p10, %p55_p6  ;;  %s43_s30 = ssub.s32 %s1355_s16, %s1782_s25 }
  0x44   : > { %s1769_s27 = scalar_select %p1526_p7, 1, 0 }
  0x45   : > { %s197_s4 = sand.u32 1, %s1347_s14   ;;  %p46_p9 = scmp.eq.s32.totalorder %s43_s30, 0 }
  0x46   : > { %s972_s29 = sshll.u32 %s197_s4, 7  ;;  %s1020_s5 = sshll.u32 %s1355_s16, 11 }
  0x47   : > { %s1535_s6 = scalar_select %p46_p9, %s1347_s14, %s48_s28  }
  0x48   : > { %s1540_s26 = scalar_lea.hbm %s1755_s0, %s1020_s5  ;;  %s201_s21 = scalar_lea.vmem [#allocation3], %s972_s29 }
  0x49   : > { %s209_s9 = sshll.u32 %s201_s21, 4  ;;  %p1544_p2 = pnand %p1111_p3, %p57_p5  ;;  %s1548_s9 = int_to_ptr.vmem [resolvable:$true] %s209_s9 }
  0x4a   : > { %s1550_s19 = scalar_lea.sflag [#allocation4], %s197_s4  ;;  %s1243_s28 = scalar_lea.hbm %s1540_s26, 2048 }
  0x4b   : > { %p1244_p11 = scmp.ne.s32.totalorder %s1540_s26, %s1243_s28  ;;  %p1245_p12 = pneg %p1544_p2 }
  0x4c   : > { %s1248_s5 = scalar_lea.hbm %s1755_s0, 4096  ;;  %p1249_p4 = scmp.lt.u32.totalorder %s1540_s26, %s1755_s0 }
  0x4d   : > { %p1246_p0 = pnand %p1245_p12, %p1244_p11  ;;  %p1250_p13 = scmp.lt.u32.totalorder %s1248_s5, %s1243_s28 }
  0x4e   : > { %p1252_p10 = scmp.lt.u32.totalorder %s1243_s28, %s1540_s26 }
  0x4f   : > { %p1247_p1 = pneg %p1246_p0  ;;  %p1251_p6 = por %p1250_p13, %p1249_p4 }
  0x51   : > { %p1253_p3 = por %p1252_p10, %p1251_p6 }
  0x53   : > { %p1254_p5 = pnand %p1253_p3, %p1247_p1 }
  0x55   : > { %1257 = shalt.err (!%p1254_p5)
}
  0x56   : > { %s1258_s4 = scalar_lea.vmem %s1548_s9, 2048  ;;  %s1365_s21 = smov [#allocation3]  }
  0x57   : > { %p1259_p9 = scmp.ne.s32.totalorder %s1548_s9, %s1258_s4  ;;  %s1263_s30 = sshll.u32 %s1365_s21, 4  ;;  %s1264_s30 = int_to_ptr.vmem [resolvable:$false] %s1263_s30 }
  0x58   : > { %s1265_s29 = scalar_lea.vmem %s1264_s30, 4096  ;;  %p1266_p7 = scmp.lt.s32.totalorder %s1548_s9, %s1264_s30 }
  0x59   : > { %p1261_p11 = pnand %p1259_p9, %p1245_p12  ;;  %p1267_p4 = scmp.lt.s32.totalorder %s1265_s29, %s1258_s4 }
  0x5b   : > { %p1262_p0 = pneg %p1261_p11  ;;  %p1268_p13 = por %p1267_p4, %p1266_p7 }
  0x5d   : > { %p1269_p6 = pnand %p1268_p13, %p1262_p0 }
  0x5f   : > { %1272 = shalt.err (!%p1269_p6)
}
  0x60   : > { %1104 = dma.hbm_to_vmem [thread:$0]  (!%p1544_p2), %s1540_s26, 2048, %s1548_s9, %s1550_s19, %s1363_s11, %s1363_s11, %s1364_s18  }
  0x61   : > { %221 = sbr.rel (%p1443_p8) target bundleno = 373 (0x175), region = 32  ;;  %s1584_s28 = sand.u32 (!%p1443_p8), 1, %s1343_s13  }
  0x62   : > { %s976_s5 = sshll.u32 (!%p1443_p8), %s1584_s28, 7  ;;  %s224_s7 = scalar_lea.sflag (!%p1443_p8), [#allocation4], %s1584_s28 }
  0x63   : > { %s1588_s8 = scalar_lea.vmem (!%p1443_p8), [#allocation3], %s976_s5  ;;  %p1771_p7 = scmp.ne.s32.totalorder (!%p1443_p8), %s1765_s22, 0 }
  0x68   : > { %1326 = dma.done.wait (%p1771_p7), %s224_s7, 2048  }
  0x69   : > { %1328 = vsyncadd (%p1771_p7), %s224_s7, 4294965248  ;;  %p1772_p2 = scmp.ne.s32.totalorder %s1763_s20, 0 }
  0x6b   : > { %1330 = dma.done.wait (%p1772_p2), [#allocation7], 208  }
  0x6c   : > { %1332 = vsyncadd (%p1772_p2), [#allocation7], 4294967088  ;;  %vm503_vm0 = vcmask 1040384   ;;  %v1169_v0 = vld [vmem:[#allocation6] sm:$0xff]   ;;  %vm454_vm1 = vcmask 146432   ;;  %v1173_v5 = vld [vmem:[%s1588_s8 + $0x8] sm:$0xff]  }
  0x6d   : > { %v1170_v1 = vld [vmem:[#allocation6 + $0x8] ss:$0 sps:$4 sm:$0x11]   ;;  %v1171_v2 = vld [vmem:[%s1588_s8] sm:$0xff]   ;;  %1040 = vmatprep.subr.bf16.mxu0 %v1169_v0  ;;  %1076 = vmatprep.subr.bf16.mxu1 %v1169_v0  ;;  %v1175_v7 = vld [vmem:[%s1588_s8 + $0x10] sm:$0xff]   ;;  %s979_s20 = sshll.u32 %s1584_s28, 8 }
  0x6e   : > { %1041 = vmatpush3.bf16.msra.mxu0 %v1169_v0  ;;  %1078 = vmatpush3.bf16.msra.mxu1 %v1169_v0  ;;  %v1172_v3 = vld [vmem:[%s1588_s8 + $0x40] sm:$0xff]   ;;  %v505_v4 = vsel %vm503_vm0, %v1170_v1, 0  ;;  %v1174_v6 = vld [vmem:[%s1588_s8 + $0x48] sm:$0xff]   ;;  %v1176_v8 = vld [vmem:[%s1588_s8 + $0x50] sm:$0xff]   ;;  %s1637_s22 = scalar_lea.vmem [#allocation9], %s979_s20  ;;  %s1021_s24 = sshll.u32 %s1351_s15, 12 }
  0x6f   : > { %1080 = vmatprep.subr.msk.bf16.mxu0 %vm503_vm0, %v1170_v1  ;;  %1081 = vmatprep.subr.msk.bf16.mxu1 %vm503_vm0, %v1170_v1  ;;  %v1177_v9 = vld [vmem:[%s1588_s8 + $0x18] sm:$0xff]   ;;  %v1179_v11 = vld [vmem:[%s1588_s8 + $0x20] sm:$0xff]   ;;  %v1181_v13 = vld [vmem:[%s1588_s8 + $0x28] sm:$0xff]   ;;  %s853_s11 = sshll.u32 %s1637_s22, 4  ;;  %s1696_s26 = scalar_lea.hbm %s1758_s3, %s1021_s24  ;;  %s1698_s11 = int_to_ptr.vmem [resolvable:$true] %s853_s11 }
  0x70   : > { %1044 = vmatprep.mubr.msk.bf16.mxu0 %vm454_vm1, %v1171_v2  ;;  %1060 = vmatprep.mubr.msk.bf16.mxu1 %vm454_vm1, %v1172_v3  ;;  %v1178_v10 = vld [vmem:[%s1588_s8 + $0x58] sm:$0xff]   ;;  %v1180_v12 = vld [vmem:[%s1588_s8 + $0x60] sm:$0xff]   ;;  %v1182_v14 = vld [vmem:[%s1588_s8 + $0x68] sm:$0xff]   ;;  %s839_s9 = scalar_lea.sflag [#allocation5], %s1584_s28  ;;  %s1273_s10 = scalar_lea.vmem %s1698_s11, 4096 }
  0x71   : > { %v1183_v15 = vld [vmem:[%s1588_s8 + $0x30] sm:$0xff]   ;;  %v1185_v17 = vld [vmem:[%s1588_s8 + $0x38] sm:$0xff]   ;;  %v1631_v19 = vld [vmem:[#allocation8] ss:$0 sm:$0xff]  ;;  %p1274_p8 = scmp.ne.s32.totalorder %s1698_s11, %s1273_s10  ;;  %p1773_p12 = scmp.ne.s32.totalorder %s1769_s27, 0 }
  0x72   : > { %1043 = vmatpush3.bf16.msra.mxu0 %v505_v4  ;;  %1079 = vmatpush3.bf16.msra.mxu1 %v505_v4  ;;  %v1184_v16 = vld [vmem:[%s1588_s8 + $0x70] sm:$0xff]   ;;  %v1186_v18 = vld [vmem:[%s1588_s8 + $0x78] sm:$0xff]   ;;  %s1366_s19 = smov [#allocation9]  }
  0x73   : > { %p1275_p1 = pnand %p1274_p8, %p1773_p12  ;;  %s1277_s4 = sshll.u32 %s1366_s19, 4  ;;  %s1278_s4 = int_to_ptr.vmem [resolvable:$false] %s1277_s4 }
  0x74   : > { %s1279_s21 = scalar_lea.vmem %s1278_s4, 8192  ;;  %p1280_p3 = scmp.lt.s32.totalorder %s1698_s11, %s1278_s4 }
  0x75   : > { %1045 = vmatmul.mubr.msk.bf16.vlgmr.msra.gmra.mrb[0].mxu0 %vm454_vm1, %v1173_v5  ;;  %1061 = vmatmul.mubr.msk.bf16.vlgmr.msra.gmra.mrb[0].mxu1 %vm454_vm1, %v1174_v6  ;;  %p1276_p10 = pneg %p1275_p1  ;;  %p1281_p5 = scmp.lt.s32.totalorder %s1279_s21, %s1273_s10 }
  0x76   : > { %1048 = vmatprep.mubr.msk.bf16.mxu0 %vm454_vm1, %v1175_v7  ;;  %1064 = vmatprep.mubr.msk.bf16.mxu1 %vm454_vm1, %v1176_v8 }
  0x77   : > { %p1282_p9 = por %p1281_p5, %p1280_p3 }
  0x79   : > { %p1283_p11 = pnand %p1282_p9, %p1276_p10 }
  0x7d   : > { %1049 = vmatmul.mubr.msk.bf16.gmra.mrb[4].mxu0 %vm454_vm1, %v1177_v9  ;;  %1065 = vmatmul.mubr.msk.bf16.gmra.mrb[4].mxu1 %vm454_vm1, %v1178_v10 }
  0x7e   : > { %1052 = vmatprep.mubr.msk.bf16.mxu0 %vm454_vm1, %v1179_v11  ;;  %1068 = vmatprep.mubr.msk.bf16.mxu1 %vm454_vm1, %v1180_v12 }
  0x85   : > { %1053 = vmatmul.mubr.msk.bf16.gmra.mrb[8].mxu0 %vm454_vm1, %v1181_v13  ;;  %1069 = vmatmul.mubr.msk.bf16.gmra.mrb[8].mxu1 %vm454_vm1, %v1182_v14 }
  0x86   : > { %1056 = vmatprep.mubr.msk.bf16.mxu0 %vm454_vm1, %v1183_v15  ;;  %1072 = vmatprep.mubr.msk.bf16.mxu1 %vm454_vm1, %v1184_v16 }
  0x8d   : > { %1057 = vmatmul.mubr.msk.bf16.gmra.mrb[12].mxu0 %vm454_vm1, %v1185_v17  ;;  %1073 = vmatmul.mubr.msk.bf16.gmra.mrb[12].mxu1 %vm454_vm1, %v1186_v18 }
 0x148   : > { %v1046_v20 = vpop.f32.mrb[0].mxu0  ;;  %v1062_v21 = vpop.f32.mrb[0].mxu1 }
 0x149   : > { %v776_v22 = vadd.f32 %v1046_v20, %v1631_v19  ;;  %v792_v23 = vadd.f32 %v1062_v21, %v1631_v19  ;;  %v541_v24 = vpop.f32.mrb[1].mxu0  ;;  %v605_v25 = vpop.f32.mrb[1].mxu1 }
 0x14a   : > { %v774_v26 = vadd.f32 %v1631_v19, %v541_v24  ;;  %v790_v27 = vadd.f32 %v1631_v19, %v605_v25  ;;  %v1047_v28 = vpop.f32.mrb[2].mxu0  ;;  %v1063_v29 = vpop.f32.mrb[2].mxu1 }
 0x14b   : > { %808 = vst [vmem:[%s1637_s22 + $0x10] sm:$0xff] %v776_v22  ;;  %824 = vst [vmem:[%s1637_s22 + $0x90] sm:$0xff] %v792_v23  ;;  %v777_v30 = vadd.f32 %v1047_v28, %v1631_v19  ;;  %v793_v31 = vadd.f32 %v1063_v29, %v1631_v19  ;;  %v544_v32 = vpop.f32.mrb[3].mxu0  ;;  %v608_v33 = vpop.f32.mrb[3].mxu1 }
 0x14c   : > { %806 = vst [vmem:[%s1637_s22] sm:$0xff] %v774_v26  ;;  %822 = vst [vmem:[%s1637_s22 + $0x80] sm:$0xff] %v790_v27  ;;  %v775_v34 = vadd.f32 %v1631_v19, %v544_v32  ;;  %v791_v35 = vadd.f32 %v1631_v19, %v608_v33 }
 0x14d   : > { %809 = vst [vmem:[%s1637_s22 + $0x18] sm:$0xff] %v777_v30  ;;  %825 = vst [vmem:[%s1637_s22 + $0x98] sm:$0xff] %v793_v31 }
 0x14e   : > { %807 = vst [vmem:[%s1637_s22 + $0x8] sm:$0xff] %v775_v34  ;;  %823 = vst [vmem:[%s1637_s22 + $0x88] sm:$0xff] %v791_v35 }
 0x150   : > { %v1050_v36 = vpop.f32.mrb[4].mxu0  ;;  %v1066_v37 = vpop.f32.mrb[4].mxu1 }
 0x151   : > { %v780_v38 = vadd.f32 %v1050_v36, %v1631_v19  ;;  %v796_v39 = vadd.f32 %v1066_v37, %v1631_v19  ;;  %v557_v40 = vpop.f32.mrb[5].mxu0  ;;  %v621_v41 = vpop.f32.mrb[5].mxu1 }
 0x152   : > { %v778_v42 = vadd.f32 %v1631_v19, %v557_v40  ;;  %v794_v43 = vadd.f32 %v1631_v19, %v621_v41  ;;  %v1051_v44 = vpop.f32.mrb[6].mxu0  ;;  %v1067_v45 = vpop.f32.mrb[6].mxu1 }
 0x153   : > { %812 = vst [vmem:[%s1637_s22 + $0x30] sm:$0xff] %v780_v38  ;;  %828 = vst [vmem:[%s1637_s22 + $0xb0] sm:$0xff] %v796_v39  ;;  %v781_v46 = vadd.f32 %v1051_v44, %v1631_v19  ;;  %v797_v47 = vadd.f32 %v1067_v45, %v1631_v19  ;;  %v560_v48 = vpop.f32.mrb[7].mxu0  ;;  %v624_v49 = vpop.f32.mrb[7].mxu1 }
 0x154   : > { %810 = vst [vmem:[%s1637_s22 + $0x20] sm:$0xff] %v778_v42  ;;  %826 = vst [vmem:[%s1637_s22 + $0xa0] sm:$0xff] %v794_v43  ;;  %v779_v50 = vadd.f32 %v1631_v19, %v560_v48  ;;  %v795_v51 = vadd.f32 %v1631_v19, %v624_v49 }
 0x155   : > { %813 = vst [vmem:[%s1637_s22 + $0x38] sm:$0xff] %v781_v46  ;;  %829 = vst [vmem:[%s1637_s22 + $0xb8] sm:$0xff] %v797_v47 }
 0x156   : > { %811 = vst [vmem:[%s1637_s22 + $0x28] sm:$0xff] %v779_v50  ;;  %827 = vst [vmem:[%s1637_s22 + $0xa8] sm:$0xff] %v795_v51 }
 0x158   : > { %v1054_v52 = vpop.f32.mrb[8].mxu0  ;;  %v1070_v53 = vpop.f32.mrb[8].mxu1 }
 0x159   : > { %v784_v54 = vadd.f32 %v1054_v52, %v1631_v19  ;;  %v800_v55 = vadd.f32 %v1070_v53, %v1631_v19  ;;  %v573_v56 = vpop.f32.mrb[9].mxu0  ;;  %v637_v57 = vpop.f32.mrb[9].mxu1 }
 0x15a   : > { %v782_v58 = vadd.f32 %v1631_v19, %v573_v56  ;;  %v798_v59 = vadd.f32 %v1631_v19, %v637_v57  ;;  %v1055_v60 = vpop.f32.mrb[10].mxu0  ;;  %v1071_v61 = vpop.f32.mrb[10].mxu1 }
 0x15b   : > { %816 = vst [vmem:[%s1637_s22 + $0x50] sm:$0xff] %v784_v54  ;;  %832 = vst [vmem:[%s1637_s22 + $0xd0] sm:$0xff] %v800_v55  ;;  %v785_v62 = vadd.f32 %v1055_v60, %v1631_v19  ;;  %v801_v63 = vadd.f32 %v1071_v61, %v1631_v19  ;;  %v576_v0 = vpop.f32.mrb[11].mxu0  ;;  %v640_v1 = vpop.f32.mrb[11].mxu1 }
 0x15c   : > { %814 = vst [vmem:[%s1637_s22 + $0x40] sm:$0xff] %v782_v58  ;;  %830 = vst [vmem:[%s1637_s22 + $0xc0] sm:$0xff] %v798_v59  ;;  %v783_v2 = vadd.f32 %v1631_v19, %v576_v0  ;;  %v799_v3 = vadd.f32 %v1631_v19, %v640_v1 }
 0x15d   : > { %817 = vst [vmem:[%s1637_s22 + $0x58] sm:$0xff] %v785_v62  ;;  %833 = vst [vmem:[%s1637_s22 + $0xd8] sm:$0xff] %v801_v63 }
 0x15e   : > { %815 = vst [vmem:[%s1637_s22 + $0x48] sm:$0xff] %v783_v2  ;;  %831 = vst [vmem:[%s1637_s22 + $0xc8] sm:$0xff] %v799_v3 }
 0x160   : > { %v1058_v4 = vpop.f32.mrb[12].mxu0  ;;  %v1074_v5 = vpop.f32.mrb[12].mxu1 }
 0x161   : > { %v788_v6 = vadd.f32 %v1058_v4, %v1631_v19  ;;  %v804_v7 = vadd.f32 %v1074_v5, %v1631_v19  ;;  %v589_v8 = vpop.f32.mrb[13].mxu0  ;;  %v653_v9 = vpop.f32.mrb[13].mxu1 }
 0x162   : > { %v786_v10 = vadd.f32 %v1631_v19, %v589_v8  ;;  %v802_v11 = vadd.f32 %v1631_v19, %v653_v9  ;;  %v1059_v12 = vpop.f32.mrb[14].mxu0  ;;  %v1075_v13 = vpop.f32.mrb[14].mxu1 }
 0x163   : > { %820 = vst [vmem:[%s1637_s22 + $0x70] sm:$0xff] %v788_v6  ;;  %836 = vst [vmem:[%s1637_s22 + $0xf0] sm:$0xff] %v804_v7  ;;  %v789_v14 = vadd.f32 %v1059_v12, %v1631_v19  ;;  %v805_v15 = vadd.f32 %v1075_v13, %v1631_v19  ;;  %v592_v16 = vpop.f32.mrb[15].mxu0  ;;  %v656_v17 = vpop.f32.mrb[15].mxu1 }
 0x164   : > { %818 = vst [vmem:[%s1637_s22 + $0x60] sm:$0xff] %v786_v10  ;;  %834 = vst [vmem:[%s1637_s22 + $0xe0] sm:$0xff] %v802_v11  ;;  %v787_v18 = vadd.f32 %v1631_v19, %v592_v16  ;;  %v803_v20 = vadd.f32 %v1631_v19, %v656_v17 }
 0x165   : > { %821 = vst [vmem:[%s1637_s22 + $0x78] sm:$0xff] %v789_v14  ;;  %837 = vst [vmem:[%s1637_s22 + $0xf8] sm:$0xff] %v805_v15 }
 0x166   : > { %819 = vst [vmem:[%s1637_s22 + $0x68] sm:$0xff] %v787_v18  ;;  %835 = vst [vmem:[%s1637_s22 + $0xe8] sm:$0xff] %v803_v20 }
 0x167   : > { %1286 = shalt.err (!%p1283_p11)
}
 0x168   : > { %s1287_s30 = scalar_lea.hbm %s1696_s26, 4096  ;;  %s1291_s7 = scalar_lea.hbm %s1758_s3, 8192 }
 0x169   : > { %p1288_p0 = scmp.ne.s32.totalorder %s1696_s26, %s1287_s30  ;;  %p1292_p6 = scmp.lt.u32.totalorder %s1696_s26, %s1758_s3 }
 0x16a   : > { %p1293_p7 = scmp.lt.u32.totalorder %s1291_s7, %s1287_s30  ;;  %p1295_p8 = scmp.lt.u32.totalorder %s1287_s30, %s1696_s26 }
 0x16b   : > { %p1289_p4 = pnand %p1288_p0, %p1773_p12 }
 0x16c   : > { %p1294_p2 = por %p1293_p7, %p1292_p6 }
 0x16d   : > { %p1290_p13 = pneg %p1289_p4 }
 0x16e   : > { %p1296_p1 = por %p1295_p8, %p1294_p2 }
 0x170   : > { %p1297_p10 = pnand %p1296_p1, %p1290_p13 }
 0x172   : > { %1300 = shalt.err (!%p1297_p10)
}
 0x173   : > { %s1367_s22 = smov 128   ;;  %s1368_s24 = smov 8  }
 0x174   : > { %1092 = dma.vmem_to_hbm [thread:$0]  (%p1773_p12), %s1698_s11, 4096, %s1696_s26, %s839_s9, %s1367_s22, %s1367_s22, %s1368_s24  }
 0x175 PF: > { %s868_s15 = sand.u32 1, %s1339_s12   ;;  %p1774_p3 = scmp.ne.s32.totalorder %s1766_s23, 0 }
 0x176   : > { %p1775_p5 = scmp.ge.s32.totalorder %s1359_s17, 2  ;;  %s869_s18 = scalar_lea.sflag [#allocation5], %s868_s15 }
 0x178   : > { %p1106_p9 = pnand %p1775_p5, %p1774_p3 }
 0x17a   : > { %1334 = dma.done.wait (!%p1106_p9), %s869_s18, 4096  }
 0x17b   : > { %1336 = vsyncadd (!%p1106_p9), %s869_s18, 4294963200  ;;  %s20_s17 = sadd.s32 1, %s1359_s17   ;;  %s1776_s12 = smov %s1343_s13 }
 0x17c   : > { %p17_p11 = scmp.ge.s32.totalorder %s20_s17, 4   ;;  %s1777_s13 = smov %s1347_s14 }
 0x17d   : > { %s1778_s14 = smov %s1535_s6  ;;  %s1779_s15 = smov %s1355_s16 }
 0x17e   : > { %s1780_s16 = smov %s1782_s25  ;;  %19 = sbr.rel (!%p17_p11) target bundleno = 7 (0x7), region = 95 }
 0x185   :  { %874 = vsyncpa [#allocation4], 1 }
 0x186   :  { %876 = vsyncpa [#allocation4 + $0x1], 1 }
 0x187   :  { %877 = vsyncpa [#allocation7], 1 }
 0x188   :  { %878 = vsyncpa [#allocation5], 1 }
 0x189   :  { %880 = vsyncpa [#allocation5 + $0x1], 1 }

</bundles_post_ra>
